<compile_context>
chip_gen: v7x
topology: tpu7x:2x2x1
jax: 0.10.0
libtpu: 0.0.40
codegen_flags: <defaults>
</compile_context>

<pallas_src>
import jax
import jax.numpy as jnp
from jax import lax
from jax.experimental import pallas as pl
from jax.experimental.pallas import tpu as pltpu


def _quantizer_kernel(temp, x_ref, cb_ref, soft_ref, hard_ref, q_ref):
    x = x_ref[...]                                   # (TB, D) f32
    cb_row = cb_ref[...][0][None, None, :]           # (1, 1, K) f32

    TB, D = x.shape
    K = cb_row.shape[-1]

    # distances[b,i,k] = exp(-sqrt((x-cb)^2)) = exp(-|x - cb|); fused, no
    # separate `diff` temporary.
    dist = jnp.exp(-jnp.abs(x[:, :, None] - cb_row))          # (TB, D, K)

    # One cross-lane max, reused for the stable-softmax shift (temp >= 0 =>
    # max(temp*dist) = temp*dist_max) and for the argmax one-hot.
    dist_max = jnp.max(dist, axis=-1, keepdims=True)          # (TB, D, 1)

    # indices_soft = softmax(temp * dist, axis=-1)
    e = jnp.exp(temp * (dist - dist_max))                     # (TB, D, K)
    denom = jnp.sum(e, axis=-1, keepdims=True)                # (TB, D, 1)
    inv = pl.reciprocal(denom, approx=False)                  # exact: rows sum to 1
    soft_ref[...] = e * inv

    # indices_hard = one-hot of argmax(dist, -1); first occurrence on ties
    # (matches torch.argmax).  iota/min formulation because Mosaic does not
    # reliably lower jnp.argmax's variadic reduce.
    iota_k = lax.broadcasted_iota(jnp.int32, (TB, D, K), 2)
    first_idx = jnp.min(jnp.where(dist >= dist_max, iota_k, K),
                        axis=-1, keepdims=True)               # (TB, D, 1)
    hard_ref[...] = (iota_k == first_idx).astype(jnp.float32)

    # quantized = soft @ cb.T == (sum_k e*cb) * (1/denom); shares `e` with the
    # softmax denominator and stays off the MXU (N=1 contraction).
    # TODO(synk): q block last dim is 8 (<128) -> masked vst; lane-dense
    # repacking in the wrapper is possible but ~1/256 of total bytes.
    q_ref[...] = jnp.sum(e * cb_row, axis=-1) * inv[:, :, 0]


def _pick_tile(B, tb_cap):
    """Batch tile: >= 2 grid steps (even count) of multiple-of-8 rows whenever
    B >= 16, so output writeback pipelines and both v7x TCs get work; single
    step only when the batch is too small to split."""
    if B < 16:
        return B
    half = -(-((B + 1) // 2) // 8) * 8     # ceil(B/2) rounded up to 8
    return min(tb_cap, half)


def quantizer_forward(inputs, codebook, temp=1e8, tb_cap=256):
    """inputs: (B, code_dim) f32; codebook: (1, codebook_dim) f32."""
    assert temp >= 0.0, "stable-softmax shift in the kernel assumes temp >= 0"
    B, D = inputs.shape
    K = codebook.shape[1]

    TB = _pick_tile(B, tb_cap)
    grid = (pl.cdiv(B, TB),)

    # VMEM budget: double-buffered I/O blocks + ~6 materialized (TB,D,K)
    # full-tile temporaries (dist, e, iota, where-result, e*cb, one-hot
    # staging) + slack.  Cap at 48 MiB (v7x has 64 MiB VMEM per TC; v5e/v6e
    # have 128 MiB so this is always safe there).
    io_blocks = 4 * (TB * D + K + TB * D * (2 * K + 1))        # x, cb, soft, hard, q
    temporaries = 6 * 4 * TB * D * K
    vmem_limit = min(max(2 * io_blocks + temporaries + (4 << 20), 16 << 20),
                     48 << 20)

    kernel = lambda x_ref, cb_ref, soft_ref, hard_ref, q_ref: _quantizer_kernel(
        temp, x_ref, cb_ref, soft_ref, hard_ref, q_ref)

    return pl.pallas_call(
        kernel,
        grid=grid,
        in_specs=[
            pl.BlockSpec((TB, D), lambda i: (i, 0)),
            pl.BlockSpec((1, K), lambda i: (0, 0)),
        ],
        out_specs=(
            pl.BlockSpec((TB, D, K), lambda i: (i, 0, 0)),
            pl.BlockSpec((TB, D, K), lambda i: (i, 0, 0)),
            pl.BlockSpec((TB, D), lambda i: (i, 0)),
        ),
        out_shape=(
            jax.ShapeDtypeStruct((B, D, K), jnp.float32),
            jax.ShapeDtypeStruct((B, D, K), jnp.float32),
            jax.ShapeDtypeStruct((B, D), jnp.float32),
        ),
        compiler_params=pltpu.CompilerParams(
            dimension_semantics=("parallel",),
            vmem_limit_bytes=vmem_limit),
    )(inputs, codebook)


def _reference_forward(inputs, codebook, temp=1e8):
    """Pure-JAX reference mirroring the PyTorch module."""
    diff = inputs[:, :, None] - codebook[0][None, None, :]
    dist = jnp.exp(-jnp.sqrt(jnp.square(diff)))
    soft = jax.nn.softmax(temp * dist, axis=-1)
    idx = jnp.argmax(dist, axis=-1)
    hard = jax.nn.one_hot(idx, codebook.shape[1], dtype=jnp.float32)
    quant = jnp.squeeze(jnp.matmul(soft, codebook.T), axis=-1)
    return soft, hard, quant


def _check(B, code_dim, codebook_dim, temp, seed, tb_cap=256):
    key = jax.random.PRNGKey(seed)
    k_cb, k_x = jax.random.split(key)
    codebook = jax.random.uniform(
        k_cb, (1, codebook_dim), dtype=jnp.float32,
        minval=-1.0 / codebook_dim, maxval=1.0 / codebook_dim)
    x = jax.random.uniform(k_x, (B, code_dim), dtype=jnp.float32,
                           minval=-1.0, maxval=1.0)

    soft, hard, quant = quantizer_forward(x, codebook, temp=temp, tb_cap=tb_cap)
    jax.block_until_ready((soft, hard, quant))

    soft_r, hard_r, quant_r = _reference_forward(x, codebook, temp=temp)
    assert jnp.allclose(soft, soft_r, atol=1e-5), "indices_soft mismatch"
    assert jnp.allclose(hard, hard_r, atol=1e-5), "indices_hard mismatch"
    assert jnp.allclose(quant, quant_r, atol=1e-5), "quantized mismatch"


if __name__ == "__main__":
    # Module config: code_dim (input_dim) = 8, codebook_dim = 128
    CODE_DIM, CODEBOOK_DIM, TEMP = 8, 128, 1e8

    # Shipped tiny shape (single grid step, TB == B).
    _check(B=2, code_dim=CODE_DIM, codebook_dim=CODEBOOK_DIM, temp=TEMP, seed=0)

    # Tiled / pipelined path: B=48 -> TB=24, grid=2 (even, exact).
    _check(B=48, code_dim=CODE_DIM, codebook_dim=CODEBOOK_DIM, temp=TEMP, seed=0)

    # Ragged last block: B=20 -> TB=16, grid=2, padded rows clipped on write.
    _check(B=20, code_dim=CODE_DIM, codebook_dim=CODEBOOK_DIM, temp=TEMP, seed=0)

    print("KERNEL_OK")
</pallas_src>

<mosaic_0001>
module attributes {stable_mosaic.version = 11 : i64} {
  func.func @_lambda_(%arg0: i32, %arg1: memref<2x8xf32, #tpu.memory_space<vmem>>, %arg2: memref<1x128xf32, #tpu.memory_space<vmem>>, %arg3: memref<2x8x128xf32, #tpu.memory_space<vmem>>, %arg4: memref<2x8x128xf32, #tpu.memory_space<vmem>>, %arg5: memref<2x8xf32, #tpu.memory_space<vmem>>) attributes {dimension_semantics = [#tpu.dimension_semantics<parallel>], iteration_bounds = array<i64: 1>, scalar_prefetch = 0 : i64, scratch_operands = 0 : i64, tpu.core_type = #tpu.core_type<tc>, window_params = [{transform_indices = @transform_0, window_bounds = array<i64: 2, 8>}, {pipeline_mode = #tpu.pipeline_mode<synchronous>, transform_indices = @transform_1, window_bounds = array<i64: 1, 128>}, {transform_indices = @transform_2, window_bounds = array<i64: 2, 8, 128>}, {transform_indices = @transform_3, window_bounds = array<i64: 2, 8, 128>}, {transform_indices = @transform_4, window_bounds = array<i64: 2, 8>}]} {
    %c0 = arith.constant 0 : index
    %c0_0 = arith.constant 0 : index
    %0 = vector.load %arg1[%c0, %c0_0] : memref<2x8xf32, #tpu.memory_space<vmem>>, vector<2x8xf32>
    %c0_1 = arith.constant 0 : index
    %c0_2 = arith.constant 0 : index
    %1 = vector.load %arg2[%c0_1, %c0_2] : memref<1x128xf32, #tpu.memory_space<vmem>>, vector<1x128xf32>
    %2 = vector.shape_cast %1 : vector<1x128xf32> to vector<128xf32>
    %3 = vector.shape_cast %2 : vector<128xf32> to vector<1x1x128xf32>
    %4 = vector.shape_cast %0 : vector<2x8xf32> to vector<2x8x1xf32>
    %5 = vector.broadcast %4 : vector<2x8x1xf32> to vector<2x8x128xf32>
    %6 = vector.broadcast %3 : vector<1x1x128xf32> to vector<2x8x128xf32>
    %7 = arith.subf %5, %6 : vector<2x8x128xf32>
    %8 = math.absf %7 : vector<2x8x128xf32>
    %cst = arith.constant 0.000000e+00 : f32
    %9 = vector.broadcast %cst : f32 to vector<2x8x128xf32>
    %10 = arith.subf %9, %8 : vector<2x8x128xf32>
    %11 = math.exp %10 : vector<2x8x128xf32>
    %cst_3 = arith.constant dense<0xFF800000> : vector<2x8xf32>
    %12 = vector.multi_reduction <maximumf>, %11, %cst_3 [2] : vector<2x8x128xf32> to vector<2x8xf32>
    %13 = vector.shape_cast %12 : vector<2x8xf32> to vector<2x8x1xf32>
    %14 = vector.broadcast %13 : vector<2x8x1xf32> to vector<2x8x128xf32>
    %15 = arith.subf %11, %14 : vector<2x8x128xf32>
    %cst_4 = arith.constant 1.000000e+08 : f32
    %16 = vector.broadcast %cst_4 : f32 to vector<2x8x128xf32>
    %17 = arith.mulf %16, %15 : vector<2x8x128xf32>
    %18 = math.exp %17 : vector<2x8x128xf32>
    %cst_5 = arith.constant dense<0.000000e+00> : vector<2x8xf32>
    %19 = vector.multi_reduction <add>, %18, %cst_5 [2] : vector<2x8x128xf32> to vector<2x8xf32>
    %20 = vector.shape_cast %19 : vector<2x8xf32> to vector<2x8x1xf32>
    %21 = tpu.reciprocal %20 : vector<2x8x1xf32> -> vector<2x8x1xf32>
    %22 = vector.broadcast %21 : vector<2x8x1xf32> to vector<2x8x128xf32>
    %23 = arith.mulf %18, %22 : vector<2x8x128xf32>
    %c0_6 = arith.constant 0 : index
    %c0_7 = arith.constant 0 : index
    %c0_8 = arith.constant 0 : index
    %24 = vector.load %arg3[%c0_6, %c0_7, %c0_8] : memref<2x8x128xf32, #tpu.memory_space<vmem>>, vector<2x8x128xf32>
    tpu.vector_store %arg3[%c0_6, %c0_7, %c0_8], %23 {strides = array<i32>} : memref<2x8x128xf32, #tpu.memory_space<vmem>>, vector<2x8x128xf32>,
    %25 = tpu.iota {dimensions = array<i32: 2>} : vector<2x8x128xi32>
    %26 = vector.broadcast %13 : vector<2x8x1xf32> to vector<2x8x128xf32>
    %27 = arith.cmpf oge, %11, %26 : vector<2x8x128xf32>
    %c128_i32 = arith.constant 128 : i32
    %28 = vector.broadcast %c128_i32 : i32 to vector<2x8x128xi32>
    %29 = arith.select %27, %25, %28 : vector<2x8x128xi1>, vector<2x8x128xi32>
    %cst_9 = arith.constant dense<2147483647> : vector<2x8xi32>
    %30 = vector.multi_reduction <minsi>, %29, %cst_9 [2] : vector<2x8x128xi32> to vector<2x8xi32>
    %31 = vector.shape_cast %30 : vector<2x8xi32> to vector<2x8x1xi32>
    %32 = vector.broadcast %31 : vector<2x8x1xi32> to vector<2x8x128xi32>
    %33 = arith.cmpi eq, %25, %32 : vector<2x8x128xi32>
    %34 = arith.extui %33 : vector<2x8x128xi1> to vector<2x8x128xi32>
    %35 = arith.sitofp %34 : vector<2x8x128xi32> to vector<2x8x128xf32>
    %c0_10 = arith.constant 0 : index
    %c0_11 = arith.constant 0 : index
    %c0_12 = arith.constant 0 : index
    %36 = vector.load %arg4[%c0_10, %c0_11, %c0_12] : memref<2x8x128xf32, #tpu.memory_space<vmem>>, vector<2x8x128xf32>
    tpu.vector_store %arg4[%c0_10, %c0_11, %c0_12], %35 {strides = array<i32>} : memref<2x8x128xf32, #tpu.memory_space<vmem>>, vector<2x8x128xf32>,
    %37 = vector.broadcast %3 : vector<1x1x128xf32> to vector<2x8x128xf32>
    %38 = arith.mulf %18, %37 : vector<2x8x128xf32>
    %cst_13 = arith.constant dense<0.000000e+00> : vector<2x8xf32>
    %39 = vector.multi_reduction <add>, %38, %cst_13 [2] : vector<2x8x128xf32> to vector<2x8xf32>
    %40 = vector.shape_cast %21 : vector<2x8x1xf32> to vector<2x8xf32>
    %41 = arith.mulf %39, %40 : vector<2x8xf32>
    %c0_14 = arith.constant 0 : index
    %c0_15 = arith.constant 0 : index
    %42 = vector.load %arg5[%c0_14, %c0_15] : memref<2x8xf32, #tpu.memory_space<vmem>>, vector<2x8xf32>
    tpu.vector_store %arg5[%c0_14, %c0_15], %41 {strides = array<i32>} : memref<2x8xf32, #tpu.memory_space<vmem>>, vector<2x8xf32>,
    return
  }
  func.func @transform_0(%arg0: i32) -> (i32, i32) {
    %c0_i32 = arith.constant 0 : i32
    %c0_i32_0 = arith.constant 0 : i32
    return %arg0, %c0_i32 : i32, i32
  }
  func.func @transform_1(%arg0: i32) -> (i32, i32) {
    %c0_i32 = arith.constant 0 : i32
    %c0_i32_0 = arith.constant 0 : i32
    %c0_i32_1 = arith.constant 0 : i32
    return %c0_i32, %c0_i32_0 : i32, i32
  }
  func.func @transform_2(%arg0: i32) -> (i32, i32, i32) {
    %c0_i32 = arith.constant 0 : i32
    %c0_i32_0 = arith.constant 0 : i32
    %c0_i32_1 = arith.constant 0 : i32
    return %arg0, %c0_i32, %c0_i32_0 : i32, i32, i32
  }
  func.func @transform_3(%arg0: i32) -> (i32, i32, i32) {
    %c0_i32 = arith.constant 0 : i32
    %c0_i32_0 = arith.constant 0 : i32
    %c0_i32_1 = arith.constant 0 : i32
    return %arg0, %c0_i32, %c0_i32_0 : i32, i32, i32
  }
  func.func @transform_4(%arg0: i32) -> (i32, i32) {
    %c0_i32 = arith.constant 0 : i32
    %c0_i32_0 = arith.constant 0 : i32
    return %arg0, %c0_i32 : i32, i32
  }
}

</mosaic_0001>

<bundles_post_ra>
// kernel: tpu_custom_call.1
= control target key start
LH: loop header
LB: loop body
LE: loop exit
PB: predicated region body
PF: predicated region fallthrough
CT: control target
= control target key end

     0   :  { %10 = vsyncpa [#allocation3], 0  ;;  %s412_s0 = inlined_call_operand.hbm [shape: f32[2,8], index: 0, kind: input, shape index: {}]   ;;  %s413_s1 = inlined_call_operand.vmem [shape: f32[1,128], index: 1, kind: input, shape index: {}]   ;;  %s414_s2 = inlined_call_operand.hbm [shape: f32[2,8,128], index: 2, kind: output, shape index: {0}]   ;;  %s415_s3 = inlined_call_operand.hbm [shape: f32[2,8,128], index: 3, kind: output, shape index: {1}]   ;;  %s416_s4 = inlined_call_operand.hbm [shape: f32[2,8], index: 4, kind: output, shape index: {2}]  }
   0x1   :  { %11 = vsyncpa [#allocation4], 0 }
   0x2   :  { %12 = vsyncpa [#allocation7], 0  ;;  %s309_s15 = smov [#allocation2]   ;;  %s215_s19 = scalar_lea.hbm %s412_s0, 32 }
   0x3   :  { %s19_s16 = sshll.u32 %s309_s15, 4  ;;  %p216_p0 = scmp.ne.s32.totalorder %s412_s0, %s215_s19  ;;  %s20_s16 = int_to_ptr.vmem [resolvable:$true] %s19_s16 }
   0x4   :  { %p219_p1 = scmp.lt.u32.totalorder %s215_s19, %s412_s0 }
   0x6   :  { %p221_p2 = pnand %p219_p1, %p216_p0 }
   0x8   :  { %224 = shalt.err (!%p221_p2)
}
   0x9   :  { %s225_s24 = scalar_lea.vmem %s20_s16, 32  ;;  %p230_p4 = scmp.lt.s32.totalorder %s20_s16, %s20_s16 }
   0xa   :  { %p226_p3 = scmp.ne.s32.totalorder %s20_s16, %s225_s24  ;;  %p231_p5 = scmp.lt.s32.totalorder %s225_s24, %s225_s24 }
   0xc   :  { %p232_p6 = por %p231_p5, %p230_p4 }
   0xe   :  { %p233_p7 = pnand %p232_p6, %p226_p3 }
  0x10   :  { %236 = shalt.err (!%p233_p7)
}
  0x11   :  { %22 = dma.hbm_to_vmem [thread:$0]  %s412_s0, 32, %s20_s16, [#allocation3]  }
  0x12   :  { %303 = dma.done.wait [#allocation3], 32  }
  0x13   :  { %304 = vsyncadd [#allocation3], 4294967264  ;;  %v30_v0 = vlaneseq  ;;  %v28_v4 = vld [vmem:[#allocation2] sm:$0x3]  ;;  %s310_s0 = smov [#allocation5]  }
  0x14   :  { %v193_v7 = vld [vmem:[%s413_s1] ss:$0 sm:$0xff]  ;;  %s152_s1 = sshll.u32 %s310_s0, 4  ;;  %s153_s1 = int_to_ptr.vmem [resolvable:$true] %s152_s1 }
  0x15   :  { %v353_v1 = vshrl.u32 %v30_v0, 7  ;;  %v360_v20 = vand.u32 127, %v30_v0  ;;  %s237_s29 = scalar_lea.vmem %s153_s1, 256  ;;  %p242_p9 = scmp.lt.s32.totalorder %s153_s1, %s153_s1 }
  0x16   :  { %p238_p8 = scmp.ne.s32.totalorder %s153_s1, %s237_s29  ;;  %p243_p10 = scmp.lt.s32.totalorder %s237_s29, %s237_s29 }
  0x17   :  { %v32_v2 = vsub.s32 0, %v353_v1  ;;  %v39_v3 = vsub.s32 1, %v353_v1 }
  0x18   :  { %p244_p11 = por %p243_p10, %p242_p9 }
  0x19   :  { %v33_v5 = vrot.slane %v28_v4, %v32_v2  ;;  %v40_v6 = vrot.slane %v28_v4, %v39_v3 }
  0x1a   :  { %p245_p12 = pnand %p244_p11, %p238_p8 }
  0x1b   :  { %35 = vbcast.lane.b32.xlu0 %v33_v5, 256 }
  0x1f   :  { %42 = vbcast.lane.b32.xlu0 %v40_v6, 256 }
  0x8d   :  { %v36_v8 = vpop.permute.xlu0 %35 }
  0x8e   :  { %v50_v9 = vsub.f32 %v36_v8, %v193_v7 }
  0x90   :  { %v52_v10 = vand.u32 2147483647, %v50_v9 }
  0x91   :  { %v43_v11 = vpop.permute.xlu0 %42 }
  0x92   :  { %v54_v12 = vsub.f32 0.0, %v52_v10  ;;  %v51_v13 = vsub.f32 %v43_v11, %v193_v7 }
  0x94   :  { %v56_v14 = vmul.f32 1.442695, %v54_v12  ;;  %v53_v15 = vand.u32 2147483647, %v51_v13 }
  0x96   :  { %203 = vpow2.f32 %v56_v14  ;;  %v55_v16 = vsub.f32 0.0, %v53_v15 }
  0x98   :  { %v58_v17 = vmul.f32 1.442695, %v55_v16 }
  0x9a   :  { %205 = vpow2.f32 %v58_v17 }
  0xa0   :  { %v204_v18 = vpop.eup %203 }
  0xa1   :  { %60 = vmax.xlane.f32.xlu1 %v204_v18 }
  0xa4   :  { %v206_v19 = vpop.eup %205 }
  0xa5   :  { %62 = vmax.xlane.f32.xlu1 %v206_v19 }
 0x12e   :  { %v61_v21 = vpop.xlane.xlu1 %60 }
 0x12f   :  { %v64_v22 = vsub.f32 %v204_v18, %v61_v21  ;;  %vm84_vm0 = vcmp.ge.f32.partialorder %v204_v18, %v61_v21 }
 0x130   :  { %v86_v23 = vsel %vm84_vm0, %v360_v20, 128 }
 0x131   :  { %v66_v24 = vmul.f32 1e+08, %v64_v22  ;;  %v89_v25 = vshra.s32 %v86_v23, 16  ;;  %v88_v38 = vand.u32 65535, %v86_v23 }
 0x132   :  { %v63_v26 = vpop.xlane.xlu1 %62 }
 0x133   :  { %v68_v27 = vmul.f32 1.442695, %v66_v24  ;;  %v65_v28 = vsub.f32 %v206_v19, %v63_v26  ;;  %vm85_vm1 = vcmp.ge.f32.partialorder %v206_v19, %v63_v26  ;;  %v91_v29 = vcvt.s32.f32 %v89_v25 }
 0x134   :  { %v87_v30 = vsel %vm85_vm1, %v360_v20, 128  ;;  %v90_v40 = vcvt.s32.f32 %v88_v38 }
 0x135   :  { %207 = vpow2.f32 %v68_v27  ;;  %v67_v31 = vmul.f32 1e+08, %v65_v28  ;;  %92 = vmin.xlane.f32.xlu0 %v91_v29  ;;  %v103_v32 = vshra.s32 %v87_v30, 16  ;;  %v102_v41 = vand.u32 65535, %v87_v30 }
 0x137   :  { %v70_v33 = vmul.f32 1.442695, %v67_v31  ;;  %v105_v34 = vcvt.s32.f32 %v103_v32  ;;  %v104_v44 = vcvt.s32.f32 %v102_v41 }
 0x139   :  { %209 = vpow2.f32 %v70_v33  ;;  %106 = vmin.xlane.f32.xlu1 %v105_v34 }
 0x13f   :  { %v208_v35 = vpop.eup %207 }
 0x140   :  { %72 = vadd.xlane.f32.xlu1 %v208_v35  ;;  %v124_v37 = vmul.f32 %v208_v35, %v193_v7 }
 0x143   :  { %v210_v36 = vpop.eup %209 }
 0x144   :  { %74 = vadd.xlane.f32.xlu1 %v210_v36  ;;  %v125_v46 = vmul.f32 %v210_v36, %v193_v7 }
 0x148   :  { %126 = vadd.xlane.f32.xlu1 %v124_v37 }
 0x1c2   :  { %v93_v39 = vpop.xlane.xlu0 %92 }
 0x1c3   :  { %vm94_vm2 = vcmp.eq.f32.partialorder %v91_v29, %v93_v39 }
 0x1c4   :  { %v95_v42 = vsel %vm94_vm2, %v90_v40, inf }
 0x1c5   :  { %96 = vmin.xlane.f32.xlu1 %v95_v42 }
 0x1c6   :  { %v107_v43 = vpop.xlane.xlu1 %106 }
 0x1c7   :  { %vm108_vm3 = vcmp.eq.f32.partialorder %v105_v34, %v107_v43 }
 0x1c8   :  { %v109_v45 = vsel %vm108_vm3, %v104_v44, inf }
 0x1c9   :  { %110 = vmin.xlane.f32.xlu1 %v109_v45 }
 0x1cd   :  { %v73_v47 = vpop.xlane.xlu1 %72  ;;  %128 = vadd.xlane.f32.xlu1 %v125_v46 }
 0x1ce   :  { %211 = vrcp.f32 %v73_v47 }
 0x1d1   :  { %v75_v48 = vpop.xlane.xlu1 %74 }
 0x1d2   :  { %213 = vrcp.f32 %v75_v48 }
 0x1d8   :  { %v212_v49 = vpop.eup %211 }
 0x1d9   :  { %v78_v50 = vmul.f32 %v212_v49, %v208_v35 }
 0x1db   :  { %80 = vst [vmem:[#allocation5] sm:$0xff] %v78_v50 }
 0x1dc   :  { %v214_v51 = vpop.eup %213 }
 0x1dd   :  { %v79_v52 = vmul.f32 %v214_v51, %v210_v36 }
 0x1df   :  { %81 = vst [vmem:[#allocation5 + $0x8] sm:$0xff] %v79_v52 }
 0x1e0   :  { %248 = shalt.err (!%p245_p12)
}
 0x1e1   :  { %s249_s6 = scalar_lea.hbm %s414_s2, 256 }
 0x1e2   :  { %p250_p13 = scmp.ne.s32.totalorder %s414_s2, %s249_s6  ;;  %p253_p0 = scmp.lt.u32.totalorder %s249_s6, %s414_s2 }
 0x1e4   :  { %p255_p1 = pnand %p253_p0, %p250_p13 }
 0x1e6   :  { %258 = shalt.err (!%p255_p1)
}
 0x1e7   :  { %s311_s11 = smov 128   ;;  %s312_s12 = smov 8   ;;  %v127_v53 = vpop.xlane.xlu1 %126  ;;  %v99_v54 = vcvt.f32.s32 %v93_v39  ;;  %v113_v57 = vcvt.f32.s32 %v107_v43  ;;  %v313_v63 = vmov 0.0   ;;  %v136_v2 = vsub.s32 %v360_v20, %v353_v1 }
 0x1e8   :  { %158 = dma.vmem_to_hbm [thread:$0]  %s153_s1, 256, %s414_s2, [#allocation4], %s311_s11, %s311_s11, %s312_s12   ;;  %v130_v3 = vmul.f32 %v212_v49, %v127_v53  ;;  %vm142_vm6 = vcmask 1041409   ;;  %vm145_vm7 = vcmask 58368  }
 0x1e9   :  { %v100_v56 = vshll.u32 %v99_v54, 16  ;;  %v114_v61 = vshll.u32 %v113_v57, 16  ;;  %s314_s15 = smov [#allocation6]   ;;  %s315_s2 = smov [#allocation8]  }
 0x1ea   :  { %s164_s16 = sshll.u32 %s314_s15, 4  ;;  %s177_s17 = sshll.u32 %s315_s2, 4  ;;  %v137_v8 = vrot.slane %v130_v3, %v136_v2  ;;  %s165_s16 = int_to_ptr.vmem [resolvable:$true] %s164_s16  ;;  %s178_s17 = int_to_ptr.vmem [resolvable:$true] %s177_s17 }
 0x1eb   :  { %s259_s18 = scalar_lea.vmem %s165_s16, 256  ;;  %p264_p3 = scmp.lt.s32.totalorder %s165_s16, %s165_s16 }
 0x1ec   :  { %p260_p2 = scmp.ne.s32.totalorder %s165_s16, %s259_s18  ;;  %p265_p4 = scmp.lt.s32.totalorder %s259_s18, %s259_s18 }
 0x1ee   :  { %p266_p5 = por %p265_p4, %p264_p3 }
 0x1f0   :  { %p267_p6 = pnand %p266_p5, %p260_p2 }
 0x252   :  { %v97_v55 = vpop.xlane.xlu1 %96 }
 0x253   :  { %v98_v58 = vcvt.f32.s32 %v97_v55 }
 0x255   :  { %v101_v59 = vadd.s32 %v100_v56, %v98_v58 }
 0x256   :  { %v111_v60 = vpop.xlane.xlu1 %110 }
 0x257   :  { %vm116_vm4 = vcmp.eq.s32.totalorder %v360_v20, %v101_v59  ;;  %v112_v62 = vcvt.f32.s32 %v111_v60 }
 0x258   :  { %v194_v0 = vsel %vm116_vm4, 1.0, %v313_v63 }
 0x259   :  { %122 = vst [vmem:[#allocation6] sm:$0xff] %v194_v0  ;;  %v115_v4 = vadd.s32 %v114_v61, %v112_v62 }
 0x25a   :  { %v129_v5 = vpop.xlane.xlu1 %128 }
 0x25b   :  { %vm117_vm5 = vcmp.eq.s32.totalorder %v360_v20, %v115_v4  ;;  %v131_v6 = vmul.f32 %v214_v51, %v129_v5 }
 0x25c   :  { %v195_v7 = vsel %vm117_vm5, 1.0, %v313_v63 }
 0x25d   :  { %123 = vst [vmem:[#allocation6 + $0x8] sm:$0xff] %v195_v7  ;;  %v141_v9 = vrot.slane %v131_v6, %v136_v2 }
 0x25e   :  { %270 = shalt.err (!%p267_p6)
}
 0x25f   :  { %s271_s21 = scalar_lea.hbm %s415_s3, 256 }
 0x260   :  { %p272_p7 = scmp.ne.s32.totalorder %s415_s3, %s271_s21  ;;  %p275_p8 = scmp.lt.u32.totalorder %s271_s21, %s415_s3 }
 0x262   :  { %p277_p9 = pnand %p275_p8, %p272_p7 }
 0x264   :  { %280 = shalt.err (!%p277_p9)
}
 0x265   :  { %170 = dma.vmem_to_hbm [thread:$0]  %s165_s16, 256, %s415_s3, [#allocation7], %s311_s11, %s311_s11, %s312_s12   ;;  %v143_v1 = vsel %vm142_vm6, %v141_v9, %v137_v8 }
 0x266   :  { %146 = vst.msk [vmem:[#allocation8] sm:$0x3] %vm145_vm7, %v143_v1  ;;  %s281_s28 = scalar_lea.vmem %s178_s17, 32  ;;  %p286_p11 = scmp.lt.s32.totalorder %s178_s17, %s178_s17 }
 0x267   :  { %p282_p10 = scmp.ne.s32.totalorder %s178_s17, %s281_s28  ;;  %p287_p12 = scmp.lt.s32.totalorder %s281_s28, %s281_s28 }
 0x269   :  { %p288_p13 = por %p287_p12, %p286_p11 }
 0x26b   :  { %p289_p0 = pnand %p288_p13, %p282_p10 }
 0x26d   :  { %292 = shalt.err (!%p289_p0)
}
 0x26e   :  { %s293_s29 = scalar_lea.hbm %s416_s4, 32 }
 0x26f   :  { %p294_p1 = scmp.ne.s32.totalorder %s416_s4, %s293_s29  ;;  %p297_p2 = scmp.lt.u32.totalorder %s293_s29, %s416_s4 }
 0x271   :  { %p299_p3 = pnand %p297_p2, %p294_p1 }
 0x273   :  { %302 = shalt.err (!%p299_p3)
}
 0x274   :  { %180 = dma.vmem_to_hbm [thread:$0]  %s178_s17, 32, %s416_s4, [#allocation7]  }
 0x275   :  { %305 = dma.done.wait [#allocation4], 256  }
 0x276   :  { %306 = vsyncadd [#allocation4], 4294967040 }
 0x277   :  { %307 = dma.done.wait [#allocation7], 288  }
 0x278   :  { %308 = vsyncadd [#allocation7], 4294967008 }
 0x279   :  { %190 = vsyncpa [#allocation3], 1 }
 0x27a   :  { %191 = vsyncpa [#allocation4], 1 }
 0x27b   :  { %192 = vsyncpa [#allocation7], 1 }

</bundles_post_ra>
